<compile_context>
chip_gen: v7x
topology: tpu7x:2x2x1
jax: 0.10.0
libtpu: 0.0.40
codegen_flags: <defaults>
</compile_context>

<pallas_src>
import functools

import jax
import jax.numpy as jnp
from jax.experimental import pallas as pl
from jax.experimental.pallas import tpu as pltpu

_MAX_CLAMP = 88.0


def _fermi_dirac_kernel(dist_ref, out_ref, *, r, inv_t):
    # Compute in f32 regardless of the stored dtype, store in the output dtype.
    x = dist_ref[...].astype(jnp.float32)
    x = (x - r) * inv_t                      # (dist - r) / t   (t is a constant)
    x = jnp.minimum(x, _MAX_CLAMP)           # torch.clamp(..., max=88)
    probs = 1.0 / (jnp.exp(x) + 1.0)         # exact divide (keeps 1e-6 tolerance)
    out_ref[...] = probs.astype(out_ref.dtype)


def fermi_dirac_decoder(dist, r, t, *, max_lane_width=1024,
                        target_block_bytes=2 * 1024 * 1024):
    """probs = 1/(exp(clamp((dist - r)/t, max=88)) + 1); same shape/dtype as dist."""
    orig_shape = dist.shape
    out_dtype = dist.dtype
    n = dist.size
    if n == 0:
        return jnp.zeros(orig_shape, out_dtype)

    bpe = dist.dtype.itemsize                 # native bytes/elem (in == out dtype)
    sub = 8 if bpe >= 4 else 16               # sublane packing (f32: 8, bf16: 16)
    min_grid_steps = 4                        # keep grid shardable on v7x's 2 TCs

    kernel = functools.partial(_fermi_dirac_kernel,
                               r=float(r), inv_t=float(1.0 / float(t)))
    cparams = pltpu.CompilerParams(dimension_semantics=("parallel",))
    flat = dist.reshape(-1)

    # Largest lane width (multiple of 128) that divides n -> zero-copy 2-D slab.
    lane_width = next((c for c in range(max_lane_width, 0, -128) if n % c == 0), 0)

    if lane_width:
        # ---- Fast path: lane-dense (rows, lane_width) slab, no extra copies.
        rows = n // lane_width
        slab = flat.reshape(rows, lane_width)
        target_rows = max(sub, (target_block_bytes // (bpe * lane_width)) // sub * sub)
        cap = max(sub, (rows // min_grid_steps) // sub * sub)
        block_rows = min(target_rows, cap)
        if rows < sub:
            block_rows = rows                 # full-extent rows (always legal)
        grid = (pl.cdiv(rows, block_rows),)   # boundary block (if any) is masked
        out = pl.pallas_call(
            kernel,
            out_shape=jax.ShapeDtypeStruct((rows, lane_width), out_dtype),
            grid=grid,
            in_specs=[pl.BlockSpec((block_rows, lane_width), lambda i: (i, 0))],
            out_specs=pl.BlockSpec((block_rows, lane_width), lambda i: (i, 0)),
            compiler_params=cparams,
        )(slab)
    else:
        # ---- Ragged path (n not divisible by 128): view as (1, n); the last
        # block overhangs and Pallas masks it -> single HBM pass, no pad/slice.
        # A (1, X) block is sublane-padded in VMEM (8x4B f32 == 16x2B bf16),
        # so size blocks off the padded footprint.
        row = flat.reshape(1, n)
        padded_bpe = 32
        target_elems = max(128, (target_block_bytes // padded_bpe) // 128 * 128)
        cap = max(128, (n // min_grid_steps) // 128 * 128)
        block_elems = min(target_elems, cap)
        if n <= block_elems:
            block_elems = n                   # full-extent block (always legal)
        grid = (pl.cdiv(n, block_elems),)
        out = pl.pallas_call(
            kernel,
            out_shape=jax.ShapeDtypeStruct((1, n), out_dtype),
            grid=grid,
            in_specs=[pl.BlockSpec((1, block_elems), lambda i: (0, i))],
            out_specs=pl.BlockSpec((1, block_elems), lambda i: (0, i)),
            compiler_params=cparams,
        )(row)

    return out.reshape(orig_shape)


def fermi_dirac_ref(dist, r, t):
    # Mirrors the PyTorch module (math in f32, result in the input dtype).
    x = (dist.astype(jnp.float32) - r) / t
    x = jnp.minimum(x, _MAX_CLAMP)
    return (1.0 / (jnp.exp(x) + 1.0)).astype(dist.dtype)


if __name__ == "__main__":
    key = jax.random.PRNGKey(0)
    k1, k2, k3 = jax.random.split(key, 3)

    # 1) Primary: f32, lane-dense fast path, multi-step grid (32 rows / 8 = 4 steps).
    r1, t1 = 2.0, 1.0
    d1 = jax.random.uniform(k1, (256, 128), jnp.float32, 0.0, 5.0)
    p1 = jax.block_until_ready(fermi_dirac_decoder(d1, r1, t1))
    e1 = fermi_dirac_ref(d1, r1, t1)
    assert p1.shape == d1.shape and p1.dtype == d1.dtype
    assert jnp.allclose(p1, e1, atol=1e-6, rtol=1e-6), "f32 fast-path mismatch"

    # 2) bf16 in / bf16 out: native-dtype path (half the HBM traffic vs f32).
    r2, t2 = 2.0, 1.0
    d2 = jax.random.uniform(k2, (2, 4, 16, 16), jnp.float32, 0.0, 5.0).astype(jnp.bfloat16)
    p2 = jax.block_until_ready(fermi_dirac_decoder(d2, r2, t2))
    e2 = fermi_dirac_ref(d2, r2, t2)
    assert p2.shape == d2.shape and p2.dtype == jnp.bfloat16
    assert jnp.allclose(p2.astype(jnp.float32), e2.astype(jnp.float32),
                        atol=1e-2, rtol=1e-2), "bf16 path mismatch"

    # 3) Ragged size (259 elems, not a multiple of 128): masked boundary block,
    #    no full-array pad / slice copies.
    r3, t3 = 0.5, 2.0
    d3 = jax.random.uniform(k3, (7, 37), jnp.float32, 0.0, 5.0)
    p3 = jax.block_until_ready(fermi_dirac_decoder(d3, r3, t3))
    e3 = fermi_dirac_ref(d3, r3, t3)
    assert p3.shape == d3.shape and p3.dtype == d3.dtype
    assert jnp.allclose(p3, e3, atol=1e-6, rtol=1e-6), "ragged path mismatch"

    print("KERNEL_OK")
</pallas_src>

<mosaic_0001>
module attributes {stable_mosaic.version = 11 : i64} {
  func.func @_fermi_dirac_kernel(%arg0: i32, %arg1: memref<8x1024xf32, #tpu.memory_space<vmem>>, %arg2: memref<8x1024xf32, #tpu.memory_space<vmem>>) attributes {dimension_semantics = [#tpu.dimension_semantics<parallel>], iteration_bounds = array<i64: 4>, scalar_prefetch = 0 : i64, scratch_operands = 0 : i64, tpu.core_type = #tpu.core_type<tc>, window_params = [{transform_indices = @transform_0, window_bounds = array<i64: 8, 1024>}, {transform_indices = @transform_1, window_bounds = array<i64: 8, 1024>}]} {
    %c0 = arith.constant 0 : index
    %c0_0 = arith.constant 0 : index
    %0 = vector.load %arg1[%c0, %c0_0] : memref<8x1024xf32, #tpu.memory_space<vmem>>, vector<8x1024xf32>
    %cst = arith.constant 2.000000e+00 : f32
    %1 = vector.broadcast %cst : f32 to vector<8x1024xf32>
    %2 = arith.subf %0, %1 : vector<8x1024xf32>
    %cst_1 = arith.constant 1.000000e+00 : f32
    %3 = vector.broadcast %cst_1 : f32 to vector<8x1024xf32>
    %4 = arith.mulf %2, %3 : vector<8x1024xf32>
    %cst_2 = arith.constant 8.800000e+01 : f32
    %5 = vector.broadcast %cst_2 : f32 to vector<8x1024xf32>
    %6 = arith.minimumf %4, %5 : vector<8x1024xf32>
    %7 = math.exp %6 : vector<8x1024xf32>
    %cst_3 = arith.constant 1.000000e+00 : f32
    %8 = vector.broadcast %cst_3 : f32 to vector<8x1024xf32>
    %9 = arith.addf %7, %8 : vector<8x1024xf32>
    %cst_4 = arith.constant 1.000000e+00 : f32
    %10 = vector.broadcast %cst_4 : f32 to vector<8x1024xf32>
    %11 = arith.divf %10, %9 : vector<8x1024xf32>
    %c0_5 = arith.constant 0 : index
    %c0_6 = arith.constant 0 : index
    %12 = vector.load %arg2[%c0_5, %c0_6] : memref<8x1024xf32, #tpu.memory_space<vmem>>, vector<8x1024xf32>
    tpu.vector_store %arg2[%c0_5, %c0_6], %11 {strides = array<i32>} : memref<8x1024xf32, #tpu.memory_space<vmem>>, vector<8x1024xf32>,
    return
  }
  func.func @transform_0(%arg0: i32) -> (i32, i32) {
    %c0_i32 = arith.constant 0 : i32
    %c0_i32_0 = arith.constant 0 : i32
    return %arg0, %c0_i32 : i32, i32
  }
  func.func @transform_1(%arg0: i32) -> (i32, i32) {
    %c0_i32 = arith.constant 0 : i32
    %c0_i32_0 = arith.constant 0 : i32
    return %arg0, %c0_i32 : i32, i32
  }
}

</mosaic_0001>

<bundles_post_ra>
// kernel: tpu_custom_call.1
= control target key start
LH: loop header
LB: loop body
LE: loop exit
PB: predicated region body
PF: predicated region fallthrough
CT: control target
= control target key end

     0   :  { %6 = vsyncpa [#allocation3], 0  ;;  %s665_s0 = inlined_call_operand.hbm [shape: f32[32,1024], index: 0, kind: input, shape index: {}]   ;;  %s666_s1 = inlined_call_operand.hbm [shape: f32[32,1024], index: 1, kind: output, shape index: {}]  }
   0x1   :  { %8 = vsyncpa [#allocation3 + $0x1], 0 }
   0x2   :  { %9 = vsyncpa [#allocation4], 0 }
   0x3   :  { %11 = vsyncpa [#allocation4 + $0x1], 0  ;;  %s502_s6 = smov 0   ;;  %s504_s7 = smov 0  }
   0x4   :  { %s506_s8 = smov 0   ;;  %s508_s9 = smov 0  }
   0x5 LB: > { %s523_s10 = sadd.s32 4294967295, %s488_s9   ;;  %s290_s11 = sadd.s32 4294967294, %s488_s9   ;;  %s488_s9 = sphi %s508_s9, %s680_s9   ;;  %s484_s8 = sphi %s506_s8, %s679_s8   ;;  %s480_s7 = sphi %s504_s7, %s678_s7   ;;  %s476_s6 = sphi %s502_s6, %s677_s6  }
   0x6   : > { %s527_s12 = sadd.s32 1, %s488_s9   ;;  %s24_s13 = sadd.s32 1, %s484_s8 }
   0x7   : > { %s21_s14 = ssub.s32 %s488_s9, %s527_s12  ;;  %p31_p0 = scmp.ne.s32.totalorder %s484_s8, %s480_s7 }
   0x8   : > { %p22_p1 = scmp.eq.s32.totalorder %s21_s14, 0  ;;  %p32_p2 = scmp.eq.s32.totalorder %s488_s9, 0 }
   0x9   : > { %p37_p3 = scmp.ne.s32.totalorder %s480_s7, %s476_s6  ;;  %p38_p4 = scmp.eq.s32.totalorder %s523_s10, 0 }
   0xa   : > { %s539_s15 = scalar_select %p22_p1, %s484_s8, %s24_s13  }
   0xb   : > { %p541_p5 = por %p32_p2, %p31_p0  ;;  %p545_p6 = por %p38_p4, %p37_p3 }
   0xc   : > { %p61_p7 = scmp.eq.s32.totalorder %s523_s10, 3  ;;  %p67_p8 = scmp.eq.s32.totalorder %s290_s11, 3 }
   0xd   : > { %p326_p9 = scmp.lt.s32.totalorder %s488_s9, 4  ;;  %s87_s20 = sand.u32 1, %s484_s8  }
   0xe   : > { %p551_p10 = por %p61_p7, %p31_p0  ;;  %p555_p11 = por %p67_p8, %p37_p3 }
   0xf   : > { %s312_s21 = sshll.u32 %s488_s9, 10  ;;  %s293_s22 = sshll.u32 %s87_s20, 6 }
  0x10   : > { %s670_s18 = scalar_select %p551_p10, 1, 0 }
  0x11   : > { %s671_s19 = scalar_select %p555_p11, 1, 0 }
  0x12   : > { %s564_s25 = scalar_lea.hbm %s665_s0, %s312_s21  ;;  %s91_s26 = scalar_lea.vmem [#allocation2], %s293_s22 }
  0x13   : > { %s99_s27 = sshll.u32 %s91_s26, 4  ;;  %p568_p12 = pnand %p326_p9, %p541_p5  ;;  %s572_s27 = int_to_ptr.vmem [resolvable:$true] %s99_s27 }
  0x14   : > { %s88_s29 = scalar_lea.sflag [#allocation3], %s87_s20  ;;  %s392_s30 = scalar_lea.hbm %s564_s25, 1024 }
  0x15   : > { %p393_p1 = scmp.ne.s32.totalorder %s564_s25, %s392_s30  ;;  %p394_p2 = pneg %p568_p12 }
  0x16   : > { %s397_s4 = scalar_lea.hbm %s665_s0, 4096  ;;  %p398_p5 = scmp.lt.u32.totalorder %s564_s25, %s665_s0 }
  0x17   : > { %p395_p3 = pnand %p394_p2, %p393_p1  ;;  %p399_p7 = scmp.lt.u32.totalorder %s397_s4, %s392_s30 }
  0x18   : > { %p401_p9 = scmp.lt.u32.totalorder %s392_s30, %s564_s25 }
  0x19   : > { %p396_p4 = pneg %p395_p3  ;;  %p400_p8 = por %p399_p7, %p398_p5 }
  0x1b   : > { %p402_p13 = por %p401_p9, %p400_p8 }
  0x1d   : > { %p403_p0 = pnand %p402_p13, %p396_p4 }
  0x1f   : > { %406 = shalt.err (!%p403_p0)
}
  0x20   : > { %s407_s13 = scalar_lea.vmem %s572_s27, 1024  ;;  %s490_s14 = smov [#allocation2]  }
  0x21   : > { %p408_p1 = scmp.ne.s32.totalorder %s572_s27, %s407_s13  ;;  %s412_s16 = sshll.u32 %s490_s14, 4  ;;  %s413_s16 = int_to_ptr.vmem [resolvable:$false] %s412_s16 }
  0x22   : > { %s414_s20 = scalar_lea.vmem %s413_s16, 2048  ;;  %p415_p10 = scmp.lt.s32.totalorder %s572_s27, %s413_s16 }
  0x23   : > { %p410_p3 = pnand %p408_p1, %p394_p2  ;;  %p416_p5 = scmp.lt.s32.totalorder %s414_s20, %s407_s13 }
  0x25   : > { %p411_p11 = pneg %p410_p3  ;;  %p417_p7 = por %p416_p5, %p415_p10 }
  0x27   : > { %p418_p8 = pnand %p417_p7, %p411_p11 }
  0x29   : > { %421 = shalt.err (!%p418_p8)
}
  0x2a   : > { %321 = dma.hbm_to_vmem [thread:$0]  (!%p568_p12), %s564_s25, 1024, %s572_s27, %s88_s29  }
  0x2b   : > { %p673_p13 = scmp.lt.s32.totalorder %s488_s9, 5  ;;  %p674_p0 = scmp.ge.s32.totalorder %s488_s9, 1 }
  0x2d   : > { %p105_p2 = pnand %p674_p0, %p673_p13 }
  0x2e   : > { %s606_s21 = sand.u32 (!%p105_p2), 1, %s480_s7  }
  0x2f   : > { %108 = sbr.rel (%p105_p2) target bundleno = 107 (0x6b), region = 24  ;;  %s297_s22 = sshll.u32 (!%p105_p2), %s606_s21, 6 }
  0x30   : > { %s111_s23 = scalar_lea.sflag (!%p105_p2), [#allocation3], %s606_s21  ;;  %s114_s24 = scalar_lea.vmem (!%p105_p2), [#allocation2], %s297_s22 }
  0x36   : > { %467 = dma.done.wait (%p545_p6), %s111_s23, 1024  }
  0x37   : > { %469 = vsyncadd (%p545_p6), %s111_s23, 4294966272  ;;  %v133_v0 = vld [vmem:[%s114_s24] sm:$0xff]  ;;  %v134_v1 = vld [vmem:[%s114_s24 + $0x8] sm:$0xff]  ;;  %s132_s17 = scalar_lea.vmem [#allocation5], %s297_s22  ;;  %s313_s25 = sshll.u32 %s523_s10, 10 }
  0x38   : > { %v135_v2 = vld [vmem:[%s114_s24 + $0x10] sm:$0xff]  ;;  %v299_v3 = vadd.f32 -2.0, %v133_v0  ;;  %v300_v4 = vadd.f32 -2.0, %v134_v1  ;;  %v136_v6 = vld [vmem:[%s114_s24 + $0x18] sm:$0xff]  ;;  %v137_v7 = vld [vmem:[%s114_s24 + $0x20] sm:$0xff]  ;;  %s220_s26 = sshll.u32 %s132_s17, 4  ;;  %s622_s29 = scalar_lea.hbm %s666_s1, %s313_s25  ;;  %s624_s26 = int_to_ptr.vmem [resolvable:$true] %s220_s26 }
  0x39   : > { %v301_v5 = vadd.f32 -2.0, %v135_v2  ;;  %v138_v8 = vld [vmem:[%s114_s24 + $0x28] sm:$0xff]  ;;  %v302_v9 = vadd.f32 -2.0, %v136_v6  ;;  %v303_v10 = vadd.f32 -2.0, %v137_v7  ;;  %v139_v12 = vld [vmem:[%s114_s24 + $0x30] sm:$0xff]  ;;  %v140_v13 = vld [vmem:[%s114_s24 + $0x38] sm:$0xff] }
  0x3a   : > { %v304_v11 = vadd.f32 -2.0, %v138_v8  ;;  %v149_v14 = vmin.f32 %v299_v3, 88.0  ;;  %v150_v15 = vmin.f32 %v300_v4, 88.0  ;;  %v305_v17 = vadd.f32 -2.0, %v139_v12  ;;  %s206_s10 = scalar_lea.sflag [#allocation4], %s606_s21  ;;  %s422_s30 = scalar_lea.vmem %s624_s26, 1024 }
  0x3b   : > { %v151_v16 = vmin.f32 %v301_v5, 88.0  ;;  %v152_v18 = vmin.f32 %v302_v9, 88.0  ;;  %v153_v19 = vmin.f32 %v303_v10, 88.0  ;;  %v306_v21 = vadd.f32 -2.0, %v140_v13  ;;  %p423_p6 = scmp.ne.s32.totalorder %s624_s26, %s422_s30  ;;  %p675_p10 = scmp.ne.s32.totalorder %s670_s18, 0 }
  0x3c   : > { %v154_v20 = vmin.f32 %v304_v11, 88.0  ;;  %v157_v22 = vmul.f32 1.442695, %v149_v14  ;;  %v159_v23 = vmul.f32 1.442695, %v150_v15  ;;  %v155_v27 = vmin.f32 %v305_v17, 88.0 }
  0x3d   : > { %v161_v24 = vmul.f32 1.442695, %v151_v16  ;;  %v163_v25 = vmul.f32 1.442695, %v152_v18  ;;  %v165_v26 = vmul.f32 1.442695, %v153_v19  ;;  %p424_p11 = pnand %p423_p6, %p675_p10 }
  0x3e   : > { %360 = vpow2.f32 %v157_v22  ;;  %v156_v28 = vmin.f32 %v306_v21, 88.0  ;;  %v167_v29 = vmul.f32 1.442695, %v154_v20  ;;  %v169_v30 = vmul.f32 1.442695, %v155_v27  ;;  %s491_s2 = smov [#allocation5]  }
  0x3f   : > { %362 = vpow2.f32 %v159_v23  ;;  %p425_p12 = pneg %p424_p11  ;;  %s426_s3 = sshll.u32 %s491_s2, 4  ;;  %s427_s3 = int_to_ptr.vmem [resolvable:$false] %s426_s3 }
  0x40   : > { %364 = vpow2.f32 %v161_v24  ;;  %v171_v31 = vmul.f32 1.442695, %v156_v28  ;;  %s428_s4 = scalar_lea.vmem %s427_s3, 2048  ;;  %p429_p4 = scmp.lt.s32.totalorder %s624_s26, %s427_s3 }
  0x41   : > { %366 = vpow2.f32 %v163_v25  ;;  %p430_p9 = scmp.lt.s32.totalorder %s428_s4, %s422_s30 }
  0x42   : > { %368 = vpow2.f32 %v165_v26 }
  0x43   : > { %370 = vpow2.f32 %v167_v29  ;;  %p431_p1 = por %p430_p9, %p429_p4 }
  0x44   : > { %372 = vpow2.f32 %v169_v30 }
  0x45   : > { %374 = vpow2.f32 %v171_v31  ;;  %p432_p3 = pnand %p431_p1, %p425_p12 }
  0x48   : > { %v361_v32 = vpop.eup %360 }
  0x49   : > { %v363_v33 = vpop.eup %362  ;;  %v173_v34 = vadd.f32 1.0, %v361_v32 }
  0x4a   : > { %v365_v35 = vpop.eup %364  ;;  %v174_v36 = vadd.f32 1.0, %v363_v33 }
  0x4b   : > { %v367_v37 = vpop.eup %366  ;;  %376 = vrcp.f32 %v173_v34  ;;  %v175_v38 = vadd.f32 1.0, %v365_v35 }
  0x4c   : > { %v369_v39 = vpop.eup %368  ;;  %378 = vrcp.f32 %v174_v36  ;;  %v176_v40 = vadd.f32 1.0, %v367_v37 }
  0x4d   : > { %v371_v41 = vpop.eup %370  ;;  %380 = vrcp.f32 %v175_v38  ;;  %v177_v42 = vadd.f32 1.0, %v369_v39 }
  0x4e   : > { %v373_v43 = vpop.eup %372  ;;  %382 = vrcp.f32 %v176_v40  ;;  %v178_v44 = vadd.f32 1.0, %v371_v41 }
  0x4f   : > { %v375_v45 = vpop.eup %374  ;;  %384 = vrcp.f32 %v177_v42  ;;  %v179_v46 = vadd.f32 1.0, %v373_v43 }
  0x50   : > { %386 = vrcp.f32 %v178_v44  ;;  %v180_v47 = vadd.f32 1.0, %v375_v45 }
  0x51   : > { %388 = vrcp.f32 %v179_v46 }
  0x52   : > { %390 = vrcp.f32 %v180_v47 }
  0x55   : > { %v377_v48 = vpop.eup %376 }
  0x56   : > { %v379_v49 = vpop.eup %378  ;;  %197 = vst [vmem:[%s132_s17] sm:$0xff] %v377_v48 }
  0x57   : > { %v381_v50 = vpop.eup %380  ;;  %198 = vst [vmem:[%s132_s17 + $0x8] sm:$0xff] %v379_v49 }
  0x58   : > { %v383_v51 = vpop.eup %382  ;;  %199 = vst [vmem:[%s132_s17 + $0x10] sm:$0xff] %v381_v50 }
  0x59   : > { %v385_v52 = vpop.eup %384  ;;  %200 = vst [vmem:[%s132_s17 + $0x18] sm:$0xff] %v383_v51 }
  0x5a   : > { %v387_v53 = vpop.eup %386  ;;  %201 = vst [vmem:[%s132_s17 + $0x20] sm:$0xff] %v385_v52 }
  0x5b   : > { %v389_v54 = vpop.eup %388  ;;  %202 = vst [vmem:[%s132_s17 + $0x28] sm:$0xff] %v387_v53 }
  0x5c   : > { %v391_v55 = vpop.eup %390  ;;  %203 = vst [vmem:[%s132_s17 + $0x30] sm:$0xff] %v389_v54 }
  0x5d   : > { %204 = vst [vmem:[%s132_s17 + $0x38] sm:$0xff] %v391_v55 }
  0x5e   : > { %435 = shalt.err (!%p432_p3)
}
  0x5f   : > { %s436_s5 = scalar_lea.hbm %s622_s29, 1024  ;;  %s440_s14 = scalar_lea.hbm %s666_s1, 4096 }
  0x60   : > { %p437_p5 = scmp.ne.s32.totalorder %s622_s29, %s436_s5  ;;  %p441_p13 = scmp.lt.u32.totalorder %s622_s29, %s666_s1 }
  0x61   : > { %p442_p0 = scmp.lt.u32.totalorder %s440_s14, %s436_s5  ;;  %p444_p6 = scmp.lt.u32.totalorder %s436_s5, %s622_s29 }
  0x62   : > { %p438_p7 = pnand %p437_p5, %p675_p10 }
  0x63   : > { %p443_p2 = por %p442_p0, %p441_p13 }
  0x64   : > { %p439_p8 = pneg %p438_p7 }
  0x65   : > { %p445_p11 = por %p444_p6, %p443_p2 }
  0x67   : > { %p446_p12 = pnand %p445_p11, %p439_p8 }
  0x69   : > { %449 = shalt.err (!%p446_p12)
}
  0x6a   : > { %316 = dma.vmem_to_hbm [thread:$0]  (%p675_p10), %s624_s26, 1024, %s622_s29, %s206_s10  }
  0x6b PF: > { %p327_p4 = scmp.ge.s32.totalorder %s488_s9, 2  ;;  %s232_s21 = sand.u32 1, %s476_s6  }
  0x6c   : > { %p676_p9 = scmp.ne.s32.totalorder %s671_s19, 0  ;;  %s233_s22 = scalar_lea.sflag [#allocation4], %s232_s21 }
  0x6e   : > { %p323_p1 = pnand %p327_p4, %p676_p9 }
  0x70   : > { %471 = dma.done.wait (!%p323_p1), %s233_s22, 1024  }
  0x71   : > { %473 = vsyncadd (!%p323_p1), %s233_s22, 4294966272  ;;  %p14_p3 = scmp.ge.s32.totalorder %s527_s12, 6   ;;  %s677_s6 = smov %s480_s7 }
  0x72   : > { %s678_s7 = smov %s484_s8  ;;  %s679_s8 = smov %s539_s15 }
  0x73   : > { %s680_s9 = smov %s527_s12  ;;  %16 = sbr.rel (!%p14_p3) target bundleno = 5 (0x5), region = 69 }
  0x7a   :  { %238 = vsyncpa [#allocation3], 1 }
  0x7b   :  { %240 = vsyncpa [#allocation3 + $0x1], 1 }
  0x7c   :  { %241 = vsyncpa [#allocation4], 1 }
  0x7d   :  { %243 = vsyncpa [#allocation4 + $0x1], 1 }

</bundles_post_ra>
